<compile_context>
chip_gen: v6e
topology: v6e:2x2x1
jax: 0.10.0
libtpu: 0.0.40
codegen_flags: <defaults>
</compile_context>

<pallas_src>
from functools import partial

import jax
import jax.numpy as jnp
from jax.experimental import pallas as pl
from jax.experimental.pallas import tpu as pltpu

HIDDEN = 128


def _round_up(n, m):
    return ((n + m - 1) // m) * m


def _choose_tile_b(B, tile_b):
    """Pick the batch tile.

    * B <= 256: one full-size tile (block dims == array dims, always legal).
    * B  > 256: tile must be a multiple of 128 (lane-dense (2, B) output), and
      is capped so the grid has >= 2 steps (both v7x TensorCores get work).
    """
    if B <= 256:
        return B
    tile_b = max(128, (tile_b // 128) * 128)
    half = _round_up((B + 1) // 2, 128)
    return min(tile_b, half)


def _default_act_dtype(matmul_dtype):
    """bf16 elementwise (tanh) only where the EUP/VPU support it (v6e / v7x)."""
    if matmul_dtype == jnp.float32:
        return jnp.float32
    try:
        kind = jax.devices()[0].device_kind.lower()
    except Exception:
        kind = ""
    if ("v6" in kind) or ("v7" in kind) or ("tpu7" in kind):
        return jnp.bfloat16
    return jnp.float32


def ppo_actor_kernel(x_ref, w1_ref, w2_ref, w3_ref, b_hidden_ref,
                     w_heads_t_ref, b_heads_t_ref, out_ref, *,
                     matmul_dtype, act_dtype):
    # Three tanh-MLP layers on the MXU (low-precision operands, f32 accumulation).
    x = x_ref[...].astype(matmul_dtype)
    h = jnp.tanh((jnp.dot(x, w1_ref[...], preferred_element_type=jnp.float32)
                  + b_hidden_ref[0:1, :]).astype(act_dtype))
    h = jnp.tanh((jnp.dot(h.astype(matmul_dtype), w2_ref[...],
                          preferred_element_type=jnp.float32)
                  + b_hidden_ref[1:2, :]).astype(act_dtype))
    h = jnp.tanh((jnp.dot(h.astype(matmul_dtype), w3_ref[...],
                          preferred_element_type=jnp.float32)
                  + b_hidden_ref[2:3, :]).astype(act_dtype))

    # Fused heads, computed directly in lane-dense orientation:
    #   heads_t = W_heads^T @ h^T  -> (2, tile_b); row 0 = mean, row 1 = log-std pre-act.
    heads_t = jax.lax.dot_general(
        w_heads_t_ref[...], h.astype(matmul_dtype),
        dimension_numbers=(((1,), (1,)), ((), ())),
        preferred_element_type=jnp.float32) + b_heads_t_ref[...]

    # Numerically stable softplus (f32); the min-clamp also keeps garbage rows
    # of a partial last batch tile finite.
    sp = jnp.where(heads_t > 20.0, heads_t,
                   jnp.log1p(jnp.exp(jnp.minimum(heads_t, 20.0))))
    row = jax.lax.broadcasted_iota(jnp.int32, heads_t.shape, dimension=0)
    out_ref[...] = jnp.where(row == 0, heads_t, sp)


def prepare_params(params, matmul_dtype=jnp.bfloat16):
    """One-time packing / casting of the weights (hoisted out of the hot path)."""
    (w1, b1, w2, b2, w3, b3, wm, bm, ws, bs) = params
    w_heads_t = jnp.concatenate([wm, ws], axis=1).T        # (2, 128)
    b_heads_t = jnp.concatenate([bm, bs], axis=1).T        # (2, 1)   f32
    b_hidden = jnp.concatenate([b1, b2, b3], axis=0)       # (3, 128) f32
    return (w1.astype(matmul_dtype),
            w2.astype(matmul_dtype),
            w3.astype(matmul_dtype),
            b_hidden,
            w_heads_t.astype(matmul_dtype),
            b_heads_t)


@partial(jax.jit, static_argnames=("tile_b", "matmul_dtype", "act_dtype"))
def ppo_actor_forward(x, prepared, *, tile_b=4096, matmul_dtype=jnp.bfloat16,
                      act_dtype=None):
    """x: (B, num_features) float32. Returns (mean, std), each (B, 1) float32."""
    B, F = x.shape
    w1c, w2c, w3c, b_hidden, w_heads_t, b_heads_t = prepared

    if act_dtype is None:
        act_dtype = _default_act_dtype(matmul_dtype)

    tb = _choose_tile_b(B, tile_b)
    grid = (pl.cdiv(B, tb),)

    def resident(shape):
        # Constant index_map -> same block every grid step -> stays in VMEM.
        return pl.BlockSpec(shape, lambda i: (0, 0))

    out = pl.pallas_call(
        partial(ppo_actor_kernel, matmul_dtype=matmul_dtype, act_dtype=act_dtype),
        out_shape=jax.ShapeDtypeStruct((2, B), jnp.float32),   # lane-dense slab
        grid=grid,
        in_specs=[
            pl.BlockSpec((tb, F), lambda i: (i, 0)),   # x: streamed over batch
            resident(w1c.shape),
            resident(w2c.shape),
            resident(w3c.shape),
            resident(b_hidden.shape),
            resident(w_heads_t.shape),
            resident(b_heads_t.shape),
        ],
        out_specs=pl.BlockSpec((2, tb), lambda i: (0, i)),
        compiler_params=pltpu.CompilerParams(
            dimension_semantics=("parallel",),          # megacore on v7x
            vmem_limit_bytes=32 * 1024 * 1024,
        ),
    )(x, w1c, w2c, w3c, b_hidden, w_heads_t, b_heads_t)

    mean = out[0, :, None]
    std = out[1, :, None]
    # TODO(synk): if log_std drifts very negative, softplus underflows to 0.0 in
    # f32 (same as the torch reference); clamp std with a small epsilon downstream
    # before using it in Normal(mean, std).
    return mean, std


def init_params(key, num_features):
    """Deterministic init mimicking nn.Linear (uniform +/- 1/sqrt(fan_in))."""
    def linear(key, fan_in, fan_out):
        kw, kb = jax.random.split(key)
        bound = 1.0 / jnp.sqrt(fan_in)
        w = jax.random.uniform(kw, (fan_in, fan_out), jnp.float32, -bound, bound)
        b = jax.random.uniform(kb, (1, fan_out), jnp.float32, -bound, bound)
        return w, b

    k1, k2, k3, k4, k5 = jax.random.split(key, 5)
    w1, b1 = linear(k1, num_features, HIDDEN)
    w2, b2 = linear(k2, HIDDEN, HIDDEN)
    w3, b3 = linear(k3, HIDDEN, HIDDEN)
    wm, bm = linear(k4, HIDDEN, 1)
    ws, bs = linear(k5, HIDDEN, 1)
    return (w1, b1, w2, b2, w3, b3, wm, bm, ws, bs)


def reference_forward(x, params):
    (w1, b1, w2, b2, w3, b3, wm, bm, ws, bs) = params
    h = jnp.tanh(x @ w1 + b1)
    h = jnp.tanh(h @ w2 + b2)
    h = jnp.tanh(h @ w3 + b3)
    mean = h @ wm + bm
    std = jax.nn.softplus(h @ ws + bs)
    return mean, std


if __name__ == "__main__":
    key = jax.random.PRNGKey(0)
    kx, kp, kx2, kp2 = jax.random.split(key, 4)

    # --- Small test (B=8, num_features=3 = pendulum obs dim), exact f32 path. ---
    B, F = 8, 3
    x = jax.random.normal(kx, (B, F), jnp.float32)
    params = init_params(kp, F)

    prep_f32 = prepare_params(params, matmul_dtype=jnp.float32)
    mean_f32, std_f32 = jax.block_until_ready(
        ppo_actor_forward(x, prep_f32, matmul_dtype=jnp.float32))
    mean_ref, std_ref = reference_forward(x, params)
    assert mean_f32.shape == (B, 1) and std_f32.shape == (B, 1)
    assert jnp.allclose(mean_f32, mean_ref, atol=1e-5, rtol=1e-5)
    assert jnp.allclose(std_f32, std_ref, atol=1e-5, rtol=1e-5)
    assert bool(jnp.all(std_f32 > 0))

    # Default path (bf16 MXU operands, f32 accumulation, bf16 tanh on v6e/v7x).
    prep_bf16 = prepare_params(params)
    mean_bf, std_bf = jax.block_until_ready(ppo_actor_forward(x, prep_bf16))
    assert mean_bf.shape == (B, 1) and std_bf.shape == (B, 1)
    assert jnp.allclose(mean_bf, mean_ref, atol=1e-1, rtol=1e-1)
    assert jnp.allclose(std_bf, std_ref, atol=1e-1, rtol=1e-1)

    # --- Larger test exercising the batch grid (B=300 -> tile 256 -> 2 steps,
    #     partial last tile), exact f32 path. ---
    B2, F2 = 300, 3
    x2 = jax.random.normal(kx2, (B2, F2), jnp.float32)
    params2 = init_params(kp2, F2)
    prep2 = prepare_params(params2, matmul_dtype=jnp.float32)
    mean2, std2 = jax.block_until_ready(
        ppo_actor_forward(x2, prep2, matmul_dtype=jnp.float32))
    mean2_ref, std2_ref = reference_forward(x2, params2)
    assert mean2.shape == (B2, 1) and std2.shape == (B2, 1)
    assert jnp.allclose(mean2, mean2_ref, atol=1e-5, rtol=1e-5)
    assert jnp.allclose(std2, std2_ref, atol=1e-5, rtol=1e-5)

    print("KERNEL_OK")
</pallas_src>

<mosaic_0001>
module attributes {stable_mosaic.version = 11 : i64} {
  func.func @ppo_actor_kernel(%arg0: i32, %arg1: memref<8x3xf32, #tpu.memory_space<vmem>>, %arg2: memref<3x128xf32, #tpu.memory_space<vmem>>, %arg3: memref<128x128xf32, #tpu.memory_space<vmem>>, %arg4: memref<128x128xf32, #tpu.memory_space<vmem>>, %arg5: memref<3x128xf32, #tpu.memory_space<vmem>>, %arg6: memref<2x128xf32, #tpu.memory_space<vmem>>, %arg7: memref<2x1xf32, #tpu.memory_space<vmem>>, %arg8: memref<2x8xf32, #tpu.memory_space<vmem>>) attributes {dimension_semantics = [#tpu.dimension_semantics<parallel>], iteration_bounds = array<i64: 1>, scalar_prefetch = 0 : i64, scratch_operands = 0 : i64, tpu.core_type = #tpu.core_type<tc>, window_params = [{transform_indices = @transform_0, window_bounds = array<i64: 8, 3>}, {pipeline_mode = #tpu.pipeline_mode<synchronous>, transform_indices = @transform_1, window_bounds = array<i64: 3, 128>}, {pipeline_mode = #tpu.pipeline_mode<synchronous>, transform_indices = @transform_2, window_bounds = array<i64: 128, 128>}, {pipeline_mode = #tpu.pipeline_mode<synchronous>, transform_indices = @transform_3, window_bounds = array<i64: 128, 128>}, {pipeline_mode = #tpu.pipeline_mode<synchronous>, transform_indices = @transform_4, window_bounds = array<i64: 3, 128>}, {pipeline_mode = #tpu.pipeline_mode<synchronous>, transform_indices = @transform_5, window_bounds = array<i64: 2, 128>}, {pipeline_mode = #tpu.pipeline_mode<synchronous>, transform_indices = @transform_6, window_bounds = array<i64: 2, 1>}, {transform_indices = @transform_7, window_bounds = array<i64: 2, 8>}]} {
    %c0 = arith.constant 0 : index
    %c0_0 = arith.constant 0 : index
    %0 = vector.load %arg1[%c0, %c0_0] : memref<8x3xf32, #tpu.memory_space<vmem>>, vector<8x3xf32>
    %c0_1 = arith.constant 0 : index
    %c0_2 = arith.constant 0 : index
    %1 = vector.load %arg2[%c0_1, %c0_2] : memref<3x128xf32, #tpu.memory_space<vmem>>, vector<3x128xf32>
    %cst = arith.constant dense<0.000000e+00> : vector<8x128xf32>
    %2 = tpu.matmul %0, %1, %cst {dimension_numbers = #tpu.dot_dimension_numbers<[1], [0], [0], [1], [0, 0, 1, 1], [], []>} : vector<8x3xf32>, vector<3x128xf32>, vector<8x128xf32> -> vector<8x128xf32>
    %c0_3 = arith.constant 0 : index
    %c0_4 = arith.constant 0 : index
    %3 = vector.load %arg5[%c0_3, %c0_4] : memref<3x128xf32, #tpu.memory_space<vmem>>, vector<1x128xf32>
    %4 = vector.broadcast %3 : vector<1x128xf32> to vector<8x128xf32>
    %5 = arith.addf %2, %4 : vector<8x128xf32>
    %6 = math.tanh %5 : vector<8x128xf32>
    %c0_5 = arith.constant 0 : index
    %c0_6 = arith.constant 0 : index
    %7 = vector.load %arg3[%c0_5, %c0_6] : memref<128x128xf32, #tpu.memory_space<vmem>>, vector<128x128xf32>
    %cst_7 = arith.constant dense<0.000000e+00> : vector<8x128xf32>
    %8 = tpu.matmul %6, %7, %cst_7 {dimension_numbers = #tpu.dot_dimension_numbers<[1], [0], [0], [1], [0, 0, 1, 1], [], []>} : vector<8x128xf32>, vector<128x128xf32>, vector<8x128xf32> -> vector<8x128xf32>
    %c1 = arith.constant 1 : index
    %c0_8 = arith.constant 0 : index
    %9 = vector.load %arg5[%c1, %c0_8] : memref<3x128xf32, #tpu.memory_space<vmem>>, vector<1x128xf32>
    %10 = vector.broadcast %9 : vector<1x128xf32> to vector<8x128xf32>
    %11 = arith.addf %8, %10 : vector<8x128xf32>
    %12 = math.tanh %11 : vector<8x128xf32>
    %c0_9 = arith.constant 0 : index
    %c0_10 = arith.constant 0 : index
    %13 = vector.load %arg4[%c0_9, %c0_10] : memref<128x128xf32, #tpu.memory_space<vmem>>, vector<128x128xf32>
    %cst_11 = arith.constant dense<0.000000e+00> : vector<8x128xf32>
    %14 = tpu.matmul %12, %13, %cst_11 {dimension_numbers = #tpu.dot_dimension_numbers<[1], [0], [0], [1], [0, 0, 1, 1], [], []>} : vector<8x128xf32>, vector<128x128xf32>, vector<8x128xf32> -> vector<8x128xf32>
    %c2 = arith.constant 2 : index
    %c0_12 = arith.constant 0 : index
    %15 = vector.load %arg5[%c2, %c0_12] : memref<3x128xf32, #tpu.memory_space<vmem>>, vector<1x128xf32>
    %16 = vector.broadcast %15 : vector<1x128xf32> to vector<8x128xf32>
    %17 = arith.addf %14, %16 : vector<8x128xf32>
    %18 = math.tanh %17 : vector<8x128xf32>
    %c0_13 = arith.constant 0 : index
    %c0_14 = arith.constant 0 : index
    %19 = vector.load %arg6[%c0_13, %c0_14] : memref<2x128xf32, #tpu.memory_space<vmem>>, vector<2x128xf32>
    %cst_15 = arith.constant dense<0.000000e+00> : vector<2x8xf32>
    %20 = tpu.matmul %19, %18, %cst_15 {dimension_numbers = #tpu.dot_dimension_numbers<[1], [1], [0], [0], [0, 0, 1, 0], [], []>} : vector<2x128xf32>, vector<8x128xf32>, vector<2x8xf32> -> vector<2x8xf32>
    %c0_16 = arith.constant 0 : index
    %c0_17 = arith.constant 0 : index
    %21 = vector.load %arg7[%c0_16, %c0_17] : memref<2x1xf32, #tpu.memory_space<vmem>>, vector<2x1xf32>
    %22 = vector.broadcast %21 : vector<2x1xf32> to vector<2x8xf32>
    %23 = arith.addf %20, %22 : vector<2x8xf32>
    %cst_18 = arith.constant 2.000000e+01 : f32
    %24 = vector.broadcast %cst_18 : f32 to vector<2x8xf32>
    %25 = arith.cmpf ogt, %23, %24 : vector<2x8xf32>
    %cst_19 = arith.constant 2.000000e+01 : f32
    %26 = vector.broadcast %cst_19 : f32 to vector<2x8xf32>
    %27 = arith.minimumf %23, %26 : vector<2x8xf32>
    %28 = math.exp %27 : vector<2x8xf32>
    %29 = math.log1p %28 : vector<2x8xf32>
    %30 = arith.select %25, %23, %29 : vector<2x8xi1>, vector<2x8xf32>
    %31 = tpu.iota {dimensions = array<i32: 0>} : vector<2x8xi32>
    %c0_i32 = arith.constant 0 : i32
    %32 = vector.broadcast %c0_i32 : i32 to vector<2x8xi32>
    %33 = arith.cmpi eq, %31, %32 : vector<2x8xi32>
    %34 = arith.select %33, %23, %30 : vector<2x8xi1>, vector<2x8xf32>
    %c0_20 = arith.constant 0 : index
    %c0_21 = arith.constant 0 : index
    %35 = vector.load %arg8[%c0_20, %c0_21] : memref<2x8xf32, #tpu.memory_space<vmem>>, vector<2x8xf32>
    tpu.vector_store %arg8[%c0_20, %c0_21], %34 {strides = array<i32>} : memref<2x8xf32, #tpu.memory_space<vmem>>, vector<2x8xf32>,
    return
  }
  func.func @transform_0(%arg0: i32) -> (i32, i32) {
    %c0_i32 = arith.constant 0 : i32
    %c0_i32_0 = arith.constant 0 : i32
    return %arg0, %c0_i32 : i32, i32
  }
  func.func @transform_1(%arg0: i32) -> (i32, i32) {
    %c0_i32 = arith.constant 0 : i32
    %c0_i32_0 = arith.constant 0 : i32
    %c0_i32_1 = arith.constant 0 : i32
    return %c0_i32, %c0_i32_0 : i32, i32
  }
  func.func @transform_2(%arg0: i32) -> (i32, i32) {
    %c0_i32 = arith.constant 0 : i32
    %c0_i32_0 = arith.constant 0 : i32
    %c0_i32_1 = arith.constant 0 : i32
    return %c0_i32, %c0_i32_0 : i32, i32
  }
  func.func @transform_3(%arg0: i32) -> (i32, i32) {
    %c0_i32 = arith.constant 0 : i32
    %c0_i32_0 = arith.constant 0 : i32
    %c0_i32_1 = arith.constant 0 : i32
    return %c0_i32, %c0_i32_0 : i32, i32
  }
  func.func @transform_4(%arg0: i32) -> (i32, i32) {
    %c0_i32 = arith.constant 0 : i32
    %c0_i32_0 = arith.constant 0 : i32
    %c0_i32_1 = arith.constant 0 : i32
    return %c0_i32, %c0_i32_0 : i32, i32
  }
  func.func @transform_5(%arg0: i32) -> (i32, i32) {
    %c0_i32 = arith.constant 0 : i32
    %c0_i32_0 = arith.constant 0 : i32
    %c0_i32_1 = arith.constant 0 : i32
    return %c0_i32, %c0_i32_0 : i32, i32
  }
  func.func @transform_6(%arg0: i32) -> (i32, i32) {
    %c0_i32 = arith.constant 0 : i32
    %c0_i32_0 = arith.constant 0 : i32
    %c0_i32_1 = arith.constant 0 : i32
    return %c0_i32, %c0_i32_0 : i32, i32
  }
  func.func @transform_7(%arg0: i32) -> (i32, i32) {
    %c0_i32 = arith.constant 0 : i32
    %c0_i32_0 = arith.constant 0 : i32
    return %c0_i32, %arg0 : i32, i32
  }
}

</mosaic_0001>

<bundles_post_ra>
// kernel: ppo_actor_forward.1
= control target key start
LH: loop header
LB: loop body
LE: loop exit
PB: predicated region body
PF: predicated region fallthrough
CT: control target
= control target key end

     0   :  { %12 = vsyncpa [#allocation3], 0  ;;  %s731_s0 = inlined_call_operand.vmem [shape: f32[8,3], index: 0, kind: input, shape index: {}]   ;;  %s732_s1 = inlined_call_operand.vmem [shape: f32[3,128], index: 1, kind: input, shape index: {}]   ;;  %s733_s2 = inlined_call_operand.hbm [shape: f32[128,128], index: 2, kind: input, shape index: {}]   ;;  %s734_s3 = inlined_call_operand.hbm [shape: f32[128,128], index: 3, kind: input, shape index: {}]   ;;  %s735_s4 = inlined_call_operand.vmem [shape: f32[3,128], index: 4, kind: input, shape index: {}]   ;;  %s736_s5 = inlined_call_operand.vmem [shape: f32[2,128], index: 5, kind: input, shape index: {}]   ;;  %s737_s6 = inlined_call_operand.vmem [shape: f32[2,1], index: 6, kind: input, shape index: {}]   ;;  %s738_s7 = inlined_call_operand.vmem [shape: f32[2,8], index: 7, kind: output, shape index: {}]  }
   0x1   :  { %13 = vsyncpa [#allocation5], 0  ;;  %s612_s24 = smov [#allocation2]  }
   0x2   :  { %s23_s25 = sshll.u32 %s612_s24, 4  ;;  %s24_s25 = int_to_ptr.vmem [resolvable:$true] %s23_s25 }
   0x3   :  { %s576_s26 = scalar_lea.vmem %s24_s25, 2048  ;;  %p581_p1 = scmp.lt.s32.totalorder %s24_s25, %s24_s25 }
   0x4   :  { %p577_p0 = scmp.ne.s32.totalorder %s24_s25, %s576_s26  ;;  %p582_p2 = scmp.lt.s32.totalorder %s576_s26, %s576_s26 }
   0x6   :  { %p583_p3 = por %p582_p2, %p581_p1 }
   0x8   :  { %p584_p4 = pnand %p583_p3, %p577_p0 }
   0xa   :  { %587 = shalt.err (!%p584_p4)
}
   0xb   :  { %s613_s27 = smov 128   ;;  %s614_s28 = smov 8  }
   0xc   :  { %29 = dma.hbm_to_vmem [thread:$0]  %s733_s2, 2048, %s24_s25, [#allocation3], %s613_s27, %s613_s27, %s614_s28  }
   0xd   :  { %s615_s8 = smov [#allocation4]  }
   0xe   :  { %s35_s9 = sshll.u32 %s615_s8, 4  ;;  %s36_s9 = int_to_ptr.vmem [resolvable:$true] %s35_s9 }
   0xf   :  { %s596_s10 = scalar_lea.vmem %s36_s9, 2048  ;;  %p601_p6 = scmp.lt.s32.totalorder %s36_s9, %s36_s9 }
  0x10   :  { %p597_p5 = scmp.ne.s32.totalorder %s36_s9, %s596_s10  ;;  %p602_p7 = scmp.lt.s32.totalorder %s596_s10, %s596_s10 }
  0x12   :  { %p603_p8 = por %p602_p7, %p601_p6 }
  0x14   :  { %p604_p9 = pnand %p603_p8, %p597_p5 }
  0x16   :  { %607 = shalt.err (!%p604_p9)
}
  0x17   :  { %41 = dma.hbm_to_vmem [thread:$0]  %s734_s3, 2048, %s36_s9, [#allocation5], %s613_s27, %s613_s27, %s614_s28  }
  0x18   :  { %608 = dma.done.wait [#allocation3], 2048  }
  0x19   :  { %609 = vsyncadd [#allocation3], 4294965248 }
  0x1a   :  { %610 = dma.done.wait [#allocation5], 2048  }
  0x1b   :  { %611 = vsyncadd [#allocation5], 4294965248  ;;  %v616_v0 = vmov 0.0   ;;  %vm617_vm0 = vmmov 0   ;;  %vm65_vm1 = vcmask 1042432   ;;  %vm61_vm2 = vcmask 23552  }
  0x1c   :  { %470 = vmatprep.subr.mxu0 %v616_v0  ;;  %472 = vmatprep.mubr.msk.f32.mxu0 %vm617_vm0, %v616_v0  ;;  %v55_v1 = vld [vmem:[%s732_s1] sm:$0x7]  ;;  %v155_v3 = vld [vmem:[#allocation2 + $0x78] sm:$0xff]  ;;  %v154_v4 = vld [vmem:[#allocation2 + $0x70] sm:$0xff]  ;;  %v618_v46 = vmov 0   ;;  %v415_v62 = vlaneseq  ;;  %vm419_vm6 = vcmask 58368  }
  0x1d   :  { %475 = vmatprep.subr.mxu1 %v616_v0  ;;  %507 = vmatprep.mubr.msk.f32.mxu1 %vm617_vm0, %v616_v0  ;;  %v54_v2 = vld [vmem:[%s731_s0] sm:$0xff]  ;;  %v153_v5 = vld [vmem:[#allocation2 + $0x68] sm:$0xff]  ;;  %v151_v7 = vld [vmem:[#allocation2 + $0x58] sm:$0xff] }
  0x1e   :  { %471 = vmatpush3.msk.msra.mxu0 %vm65_vm1, %v55_v1  ;;  %476 = vmatpush3.msra.mxu1 %v155_v3  ;;  %v152_v6 = vld [vmem:[#allocation2 + $0x60] sm:$0xff]  ;;  %v150_v8 = vld [vmem:[#allocation2 + $0x50] sm:$0xff]  ;;  %v149_v9 = vld [vmem:[#allocation2 + $0x48] sm:$0xff]  ;;  %v416_v1 = vshrl.u32 %v415_v62, 7 }
  0x1f   :  { %473 = vmatmul.mubr.msk.f32.vlgmr.msra.gmra.mxu0 %vm61_vm2, %v54_v2  ;;  %477 = vmatprep.subr.mxu1 %v616_v0  ;;  %v148_v10 = vld [vmem:[#allocation2 + $0x40] sm:$0xff]  ;;  %v147_v11 = vld [vmem:[#allocation2 + $0x38] sm:$0xff]  ;;  %v146_v12 = vld [vmem:[#allocation2 + $0x30] sm:$0xff] }
  0x20   :  { %478 = vmatpush3.msra.mxu1 %v154_v4  ;;  %510 = vmatprep.subr.mxu0 %v616_v0  ;;  %v145_v13 = vld [vmem:[#allocation2 + $0x28] sm:$0xff]  ;;  %v144_v14 = vld [vmem:[#allocation2 + $0x20] sm:$0xff]  ;;  %v143_v15 = vld [vmem:[#allocation2 + $0x18] sm:$0xff]  ;;  %vm417_vm4 = vcmp.eq.s32.totalorder %v416_v1, 0 }
  0x21   :  { %479 = vmatprep.subr.mxu1 %v616_v0  ;;  %542 = vmatprep.mubr.msk.f32.mxu0 %vm617_vm0, %v616_v0  ;;  %v142_v16 = vld [vmem:[#allocation2 + $0x10] sm:$0xff]  ;;  %v141_v17 = vld [vmem:[#allocation2 + $0x8] sm:$0xff]  ;;  %v140_v18 = vld [vmem:[#allocation2] sm:$0xff] }
  0x22   :  { %480 = vmatpush3.msra.mxu1 %v153_v5  ;;  %v247_v19 = vld [vmem:[#allocation4 + $0x78] sm:$0xff]  ;;  %v246_v20 = vld [vmem:[#allocation4 + $0x70] sm:$0xff]  ;;  %v245_v21 = vld [vmem:[#allocation4 + $0x68] sm:$0xff]  ;;  %557 = vset.pattern.permute.xlu0 %v618_v46 }
  0x23   :  { %481 = vmatprep.subr.mxu1 %v616_v0  ;;  %511 = vmatpush3.msra.mxu0 %v247_v19  ;;  %v244_v22 = vld [vmem:[#allocation4 + $0x60] sm:$0xff]  ;;  %v243_v23 = vld [vmem:[#allocation4 + $0x58] sm:$0xff]  ;;  %v242_v24 = vld [vmem:[#allocation4 + $0x50] sm:$0xff] }
  0x24   :  { %482 = vmatpush3.msra.mxu1 %v152_v6  ;;  %512 = vmatprep.subr.mxu0 %v616_v0  ;;  %v241_v25 = vld [vmem:[#allocation4 + $0x48] sm:$0xff]  ;;  %v427_v26 = vld [vmem:[%s735_s4] ss:$0 sm:$0xff]  ;;  %v239_v32 = vld [vmem:[#allocation4 + $0x38] sm:$0xff] }
  0x25   :  { %483 = vmatprep.subr.mxu1 %v616_v0  ;;  %513 = vmatpush3.msra.mxu0 %v246_v20  ;;  %v240_v31 = vld [vmem:[#allocation4 + $0x40] sm:$0xff]  ;;  %v238_v33 = vld [vmem:[#allocation4 + $0x30] sm:$0xff]  ;;  %v237_v34 = vld [vmem:[#allocation4 + $0x28] sm:$0xff] }
  0x26   :  { %484 = vmatpush3.msra.mxu1 %v151_v7  ;;  %514 = vmatprep.subr.mxu0 %v616_v0  ;;  %v236_v35 = vld [vmem:[#allocation4 + $0x20] sm:$0xff]  ;;  %v235_v36 = vld [vmem:[#allocation4 + $0x18] sm:$0xff]  ;;  %v234_v37 = vld [vmem:[#allocation4 + $0x10] sm:$0xff] }
  0x27   :  { %485 = vmatprep.subr.mxu1 %v616_v0  ;;  %515 = vmatpush3.msra.mxu0 %v245_v21  ;;  %v233_v38 = vld [vmem:[#allocation4 + $0x8] sm:$0xff]  ;;  %v232_v39 = vld [vmem:[#allocation4] sm:$0xff] }
  0x28   :  { %486 = vmatpush3.msra.mxu1 %v150_v8  ;;  %516 = vmatprep.subr.mxu0 %v616_v0  ;;  %v430_v40 = vld [vmem:[%s735_s4 + $0x1] ss:$0 sm:$0xff]  ;;  %v431_v47 = vld [vmem:[%s735_s4 + $0x2] ss:$0 sm:$0xff] }
  0x29   :  { %487 = vmatprep.subr.mxu1 %v616_v0  ;;  %517 = vmatpush3.msra.mxu0 %v244_v22  ;;  %v325_v45 = vld [vmem:[%s737_s6] sm:$0x3] }
  0x2a   :  { %488 = vmatpush3.msra.mxu1 %v149_v9  ;;  %518 = vmatprep.subr.mxu0 %v616_v0  ;;  %v324_v52 = vld [vmem:[%s736_s5] sm:$0x3] }
  0x2b   :  { %489 = vmatprep.subr.mxu1 %v616_v0  ;;  %519 = vmatpush3.msra.mxu0 %v243_v23 }
  0x2c   :  { %490 = vmatpush3.msra.mxu1 %v148_v10  ;;  %520 = vmatprep.subr.mxu0 %v616_v0 }
  0x2d   :  { %491 = vmatprep.subr.mxu1 %v616_v0  ;;  %521 = vmatpush3.msra.mxu0 %v242_v24 }
  0x2e   :  { %492 = vmatpush3.msra.mxu1 %v147_v11  ;;  %522 = vmatprep.subr.mxu0 %v616_v0 }
  0x2f   :  { %493 = vmatprep.subr.mxu1 %v616_v0  ;;  %523 = vmatpush3.msra.mxu0 %v241_v25 }
  0x30   :  { %494 = vmatpush3.msra.mxu1 %v146_v12  ;;  %524 = vmatprep.subr.mxu0 %v616_v0 }
  0x31   :  { %495 = vmatprep.subr.mxu1 %v616_v0  ;;  %525 = vmatpush3.msra.mxu0 %v240_v31 }
  0x32   :  { %496 = vmatpush3.msra.mxu1 %v145_v13  ;;  %526 = vmatprep.subr.mxu0 %v616_v0 }
  0x33   :  { %497 = vmatprep.subr.mxu1 %v616_v0  ;;  %527 = vmatpush3.msra.mxu0 %v239_v32 }
  0x34   :  { %498 = vmatpush3.msra.mxu1 %v144_v14  ;;  %528 = vmatprep.subr.mxu0 %v616_v0 }
  0x35   :  { %499 = vmatprep.subr.mxu1 %v616_v0  ;;  %529 = vmatpush3.msra.mxu0 %v238_v33 }
  0x36   :  { %500 = vmatpush3.msra.mxu1 %v143_v15  ;;  %530 = vmatprep.subr.mxu0 %v616_v0 }
  0x37   :  { %501 = vmatprep.subr.mxu1 %v616_v0  ;;  %531 = vmatpush3.msra.mxu0 %v237_v34 }
  0x38   :  { %502 = vmatpush3.msra.mxu1 %v142_v16  ;;  %532 = vmatprep.subr.mxu0 %v616_v0 }
  0x39   :  { %503 = vmatprep.subr.mxu1 %v616_v0  ;;  %533 = vmatpush3.msra.mxu0 %v236_v35 }
  0x3a   :  { %504 = vmatpush3.msra.mxu1 %v141_v17  ;;  %534 = vmatprep.subr.mxu0 %v616_v0 }
  0x3b   :  { %505 = vmatprep.subr.mxu1 %v616_v0  ;;  %535 = vmatpush3.msra.mxu0 %v235_v36 }
  0x3c   :  { %506 = vmatpush3.msra.mxu1 %v140_v18  ;;  %536 = vmatprep.subr.mxu0 %v616_v0 }
  0x3d   :  { %545 = vmatprep.subr.mxu1 %v616_v0  ;;  %537 = vmatpush3.msra.mxu0 %v234_v37 }
  0x3e   :  { %538 = vmatprep.subr.mxu0 %v616_v0  ;;  %328 = vperm.xlu0 %557, %v325_v45  }
  0x3f   :  { %539 = vmatpush3.msra.mxu0 %v233_v38 }
  0x40   :  { %540 = vmatprep.subr.mxu0 %v616_v0 }
  0x41   :  { %541 = vmatpush3.msra.mxu0 %v232_v39 }
  0xb9   :  { %v329_v53 = vpop.permute.xlu0 %328 }
  0xdf   :  { %v135_v27 = vpop.f32.mrf.mxu0 }
  0xe0   :  { %v136_v28 = vadd.f32 %v427_v26, %v135_v27 }
  0xe1   :  { %v474_v29 = vpop.f32.mrf.mxu0 }
  0xe2   :  { %558 = vtanh.f32 %v136_v28 }
  0xef   :  { %v559_v30 = vpop.eup %558 }
  0xf0   :  { %508 = vmatmul.mubr.f32.vlgmr.msra.gmra.mxu1 %v559_v30 }
  0xf1   :  { %547 = vmatprep.mubr.msk.f32.mxu1 %vm617_vm0, %v616_v0 }
 0x1b0   :  { %v227_v41 = vpop.f32.mrf.mxu1 }
 0x1b1   :  { %v228_v42 = vadd.f32 %v430_v40, %v227_v41 }
 0x1b2   :  { %v509_v43 = vpop.f32.mrf.mxu1 }
 0x1b3   :  { %560 = vtanh.f32 %v228_v42 }
 0x1c0   :  { %v561_v44 = vpop.eup %560 }
 0x1c1   :  { %543 = vmatmul.mubr.f32.vlgmr.msra.gmra.mxu0 %v561_v44 }
 0x281   :  { %v319_v48 = vpop.f32.mrf.mxu0 }
 0x282   :  { %v320_v49 = vadd.f32 %v431_v47, %v319_v48 }
 0x283   :  { %v544_v50 = vpop.f32.mrf.mxu0 }
 0x284   :  { %562 = vtanh.f32 %v320_v49 }
 0x291   :  { %v563_v51 = vpop.eup %562 }
 0x292   :  { %546 = vmatpush3.xpose.msra.mxu1 %v563_v51 }
 0x295   :  { %548 = vmatmul.mubr.f32.vlgmr.msra.gmra.mxu1 %v324_v52 }
 0x355   :  { %v397_v54 = vpop.f32.mrf.mxu1 }
 0x356   :  { %v398_v55 = vadd.f32 %v397_v54, %v329_v53 }
 0x357   :  { %v549_v56 = vpop.f32.mrf.mxu1 }
 0x358   :  { %v402_v57 = vmin.f32 %v398_v55, 20.0  ;;  %vm401_vm5 = vcmp.gt.f32.partialorder %v398_v55, 20.0 }
 0x35a   :  { %v403_v58 = vmul.f32 1.442695, %v402_v57 }
 0x35c   :  { %564 = vpow2.f32 %v403_v58 }
 0x369   :  { %v565_v59 = vpop.eup %564 }
 0x36a   :  { %v405_v60 = vadd.f32 1.0, %v565_v59  ;;  %v408_v61 = vmul.f32 -0.5, %v565_v59  ;;  %v411_v0 = vand.u32 2147483647, %v565_v59 }
 0x36c   :  { %566 = vlog2.f32 %v405_v60  ;;  %v409_v63 = vadd.f32 1.0, %v408_v61  ;;  %vm412_vm3 = vcmp.lt.f32.partialorder %v411_v0, 0.0004427343 }
 0x36e   :  { %v410_v4 = vmul.f32 %v565_v59, %v409_v63 }
 0x379   :  { %v567_v2 = vpop.eup %566 }
 0x37a   :  { %v407_v3 = vmul.f32 0.6931472, %v567_v2 }
 0x37c   :  { %v413_v5 = vsel %vm412_vm3, %v410_v4, %v407_v3 }
 0x37d   :  { %v414_v6 = vsel %vm401_vm5, %v398_v55, %v413_v5 }
 0x37e   :  { %v418_v7 = vsel %vm417_vm4, %v398_v55, %v414_v6 }
 0x37f   :  { %420 = vst.msk [vmem:[%s738_s7] sm:$0x3] %vm419_vm6, %v418_v7 }
 0x380   :  { %425 = vsyncpa [#allocation3], 1 }
 0x381   :  { %426 = vsyncpa [#allocation5], 1 }

</bundles_post_ra>
